<compile_context>
chip_gen: v7x
topology: tpu7x:2x2x1
jax: 0.10.0
libtpu: 0.0.40
codegen_flags: <defaults>
</compile_context>

<pallas_src>
import jax
import jax.numpy as jnp
from jax.experimental import pallas as pl
from jax.experimental.pallas import tpu as pltpu


def _round_up(x, m):
    return ((x + m - 1) // m) * m


def aunet_kernel(x_ref, w_ref, b_ref, out_ref):
    # x_ref:   (TILE_B, D)       bf16
    # w_ref:   (D, 2*au_pad)     bf16   (fused + column-padded weights, resident)
    # b_ref:   (1, 2*au_pad)     f32    (fused + column-padded bias, resident)
    # out_ref: (TILE_B, 2*au_pad) f32
    au_pad = out_ref.shape[1] // 2

    # Single fused matmul on the MXU, f32 accumulation; bias add in f32.
    y = jnp.dot(x_ref[...], w_ref[...], preferred_element_type=jnp.float32) + b_ref[...]

    # Class-0 / class-1 logits live in lane-aligned 128-multiple column ranges,
    # so these slices are clean vreg selections (no cross-lane shuffles).
    y0 = y[:, :au_pad]
    y1 = y[:, au_pad:]

    # 2-class log-softmax: lse = max + log(1 + exp(-|y1 - y0|))  (exp + log only).
    m = jnp.maximum(y0, y1)
    d = jnp.abs(y1 - y0)
    lse = m + jnp.log(1.0 + jnp.exp(-d))

    # Direct lane-aligned stores (no concatenate temporary, unmasked vst).
    out_ref[:, :au_pad] = (y0 - lse).astype(out_ref.dtype)
    out_ref[:, au_pad:] = (y1 - lse).astype(out_ref.dtype)


def aunet_forward(x, w1, b1, w2, b2, au_num, tile_b=256):
    """x: (B, ...); returns (B, 2, au_num) log-probabilities."""
    B = x.shape[0]
    xf = x.reshape(B, -1).astype(jnp.float32)
    D = xf.shape[1]

    # --- Algebraic fusion of the two Linears (valid: no activation between). ---
    w_fused = w1 @ w2                      # (D, 2*au_num), f32
    b_fused = b1 @ w2 + b2                 # (1, 2*au_num), f32

    # --- Lane-dense padded layout: each class padded to a multiple of 128. ---
    au_pad = _round_up(au_num, 128)
    o_pad = 2 * au_pad
    w_pad = jnp.zeros((D, o_pad), jnp.float32)
    w_pad = w_pad.at[:, :au_num].set(w_fused[:, :au_num])
    w_pad = w_pad.at[:, au_pad:au_pad + au_num].set(w_fused[:, au_num:])
    b_pad = jnp.zeros((1, o_pad), jnp.float32)
    b_pad = b_pad.at[:, :au_num].set(b_fused[:, :au_num])
    b_pad = b_pad.at[:, au_pad:au_pad + au_num].set(b_fused[:, au_num:])

    # --- Batch tiling (rows padded to a multiple of the tile). ---
    tile_B = min(tile_b, _round_up(B, 8))
    B_pad = _round_up(B, tile_B)
    if B_pad != B:
        xf = jnp.pad(xf, ((0, B_pad - B), (0, 0)))

    # bf16 operands for the MXU (f32 accumulation inside the kernel).
    x_bf = xf.astype(jnp.bfloat16)
    w_bf = w_pad.astype(jnp.bfloat16)

    grid = (B_pad // tile_B,)

    # VMEM budget: resident weights + double-buffered x / out tiles (+ headroom).
    vmem_need = (2 * tile_B * D * 2          # 2x bf16 x tiles (double-buffered)
                 + 2 * D * o_pad * 2         # bf16 weights (budget 2 buffers)
                 + 2 * o_pad * 4             # bias
                 + 2 * tile_B * o_pad * 4)   # 2x f32 output tiles
    vmem_limit = int(min(max(2 * vmem_need, 32 << 20), 64 << 20))

    cost = pl.CostEstimate(
        flops=2 * B_pad * D * o_pad,
        transcendentals=2 * B_pad * au_pad,
        bytes_accessed=x_bf.size * 2 + w_bf.size * 2 + b_pad.size * 4
        + B_pad * o_pad * 4,
    )

    out_pad = pl.pallas_call(
        aunet_kernel,
        out_shape=jax.ShapeDtypeStruct((B_pad, o_pad), jnp.float32),
        grid_spec=pltpu.PrefetchScalarGridSpec(
            num_scalar_prefetch=0,
            grid=grid,
            in_specs=[
                pl.BlockSpec((tile_B, D), lambda i: (i, 0)),   # x: tiled over batch
                pl.BlockSpec((D, o_pad), lambda i: (0, 0)),    # weights: resident
                pl.BlockSpec((1, o_pad), lambda i: (0, 0)),    # bias: resident
            ],
            out_specs=pl.BlockSpec((tile_B, o_pad), lambda i: (i, 0)),
        ),
        compiler_params=pltpu.CompilerParams(
            dimension_semantics=("parallel",),
            vmem_limit_bytes=vmem_limit,
        ),
        cost_estimate=cost,
    )(x_bf, w_bf, b_pad)

    # Slice away batch / lane padding and rebuild the (B, 2, au_num) view.
    lp0 = out_pad[:B, :au_num]
    lp1 = out_pad[:B, au_pad:au_pad + au_num]
    return jnp.stack([lp0, lp1], axis=1)


def init_params(key, input_dim, unit_dim, au_num):
    hidden = unit_dim * 64
    out_dim = au_num * 2
    k1, k2, k3, k4 = jax.random.split(key, 4)
    s1 = 1.0 / jnp.sqrt(jnp.float32(input_dim))
    s2 = 1.0 / jnp.sqrt(jnp.float32(hidden))
    w1 = jax.random.uniform(k1, (input_dim, hidden), jnp.float32, -s1, s1)
    b1 = jax.random.uniform(k2, (1, hidden), jnp.float32, -s1, s1)
    w2 = jax.random.uniform(k3, (hidden, out_dim), jnp.float32, -s2, s2)
    b2 = jax.random.uniform(k4, (1, out_dim), jnp.float32, -s2, s2)
    return w1, b1, w2, b2


def aunet_reference(x, w1, b1, w2, b2, au_num):
    """Pure-f32, unfused reference == exact PyTorch module semantics."""
    B = x.shape[0]
    xf = x.reshape(B, -1).astype(jnp.float32)
    h = xf @ w1 + b1
    y = h @ w2 + b2
    y = y.reshape(B, 2, au_num)
    return jax.nn.log_softmax(y, axis=1)


def aunet_matched_reference(x, w1, b1, w2, b2, au_num):
    """Reference using the same fusion + bf16 operand precision as the kernel."""
    B = x.shape[0]
    xf = x.reshape(B, -1).astype(jnp.float32)
    w_fused = w1 @ w2
    b_fused = b1 @ w2 + b2
    y = jnp.dot(xf.astype(jnp.bfloat16), w_fused.astype(jnp.bfloat16),
                preferred_element_type=jnp.float32) + b_fused
    y = y.reshape(B, 2, au_num)
    return jax.nn.log_softmax(y, axis=1)


if __name__ == "__main__":
    # Small shapes consistent with the module:
    #   x flattened dim = 4*16*16 = 1024 -> input_dim=1024
    #   unit_dim=2 -> hidden=128 ; au_num=8 -> output (B, 2, 8)
    B, C, H, W = 2, 4, 16, 16
    input_dim = C * H * W
    unit_dim = 2
    au_num = 8

    key = jax.random.PRNGKey(0)
    kx, kp = jax.random.split(key)
    x = jax.random.normal(kx, (B, C, H, W), jnp.float32)
    w1, b1, w2, b2 = init_params(kp, input_dim, unit_dim, au_num)

    out = aunet_forward(x, w1, b1, w2, b2, au_num)
    out = jax.block_until_ready(out)
    assert out.shape == (B, 2, au_num)

    # Tight check vs. a reference with matched (fused, bf16-operand) precision.
    ref_matched = aunet_matched_reference(x, w1, b1, w2, b2, au_num)
    assert jnp.allclose(out, ref_matched, atol=1e-4, rtol=1e-4), \
        "mismatch vs matched-precision reference"

    # Looser check vs. the exact f32 module semantics (bf16 operands + weight
    # fusion introduce ~1e-3 level differences at these shapes).
    ref = aunet_reference(x, w1, b1, w2, b2, au_num)
    assert jnp.allclose(out, ref, atol=3e-2, rtol=3e-2), \
        "mismatch vs f32 module reference"

    print("KERNEL_OK")
</pallas_src>

<mosaic_0001>
module attributes {stable_mosaic.version = 11 : i64} {
  func.func @aunet_kernel(%arg0: i32, %arg1: memref<8x1024xbf16, #tpu.memory_space<vmem>>, %arg2: memref<1024x256xbf16, #tpu.memory_space<vmem>>, %arg3: memref<1x256xf32, #tpu.memory_space<vmem>>, %arg4: memref<8x256xf32, #tpu.memory_space<vmem>>) attributes {dimension_semantics = [#tpu.dimension_semantics<parallel>], iteration_bounds = array<i64: 1>, scalar_prefetch = 0 : i64, scratch_operands = 0 : i64, tpu.core_type = #tpu.core_type<tc>, window_params = [{transform_indices = @transform_0, window_bounds = array<i64: 8, 1024>}, {pipeline_mode = #tpu.pipeline_mode<synchronous>, transform_indices = @transform_1, window_bounds = array<i64: 1024, 256>}, {pipeline_mode = #tpu.pipeline_mode<synchronous>, transform_indices = @transform_2, window_bounds = array<i64: 1, 256>}, {transform_indices = @transform_3, window_bounds = array<i64: 8, 256>}]} {
    %c0 = arith.constant 0 : index
    %c0_0 = arith.constant 0 : index
    %0 = vector.load %arg1[%c0, %c0_0] : memref<8x1024xbf16, #tpu.memory_space<vmem>>, vector<8x1024xbf16>
    %c0_1 = arith.constant 0 : index
    %c0_2 = arith.constant 0 : index
    %1 = vector.load %arg2[%c0_1, %c0_2] : memref<1024x256xbf16, #tpu.memory_space<vmem>>, vector<1024x256xbf16>
    %cst = arith.constant dense<0.000000e+00> : vector<8x256xf32>
    %2 = tpu.matmul %0, %1, %cst {dimension_numbers = #tpu.dot_dimension_numbers<[1], [0], [0], [1], [0, 0, 1, 1], [], []>} : vector<8x1024xbf16>, vector<1024x256xbf16>, vector<8x256xf32> -> vector<8x256xf32>
    %c0_3 = arith.constant 0 : index
    %c0_4 = arith.constant 0 : index
    %3 = vector.load %arg3[%c0_3, %c0_4] : memref<1x256xf32, #tpu.memory_space<vmem>>, vector<1x256xf32>
    %4 = vector.broadcast %3 : vector<1x256xf32> to vector<8x256xf32>
    %5 = arith.addf %2, %4 : vector<8x256xf32>
    %6 = vector.extract_strided_slice %5 {offsets = [0, 0], sizes = [8, 128], strides = [1, 1]} : vector<8x256xf32> to vector<8x128xf32>
    %7 = vector.extract_strided_slice %5 {offsets = [0, 128], sizes = [8, 128], strides = [1, 1]} : vector<8x256xf32> to vector<8x128xf32>
    %8 = arith.maximumf %6, %7 : vector<8x128xf32>
    %9 = arith.subf %7, %6 : vector<8x128xf32>
    %10 = math.absf %9 : vector<8x128xf32>
    %cst_5 = arith.constant 0.000000e+00 : f32
    %11 = vector.broadcast %cst_5 : f32 to vector<8x128xf32>
    %12 = arith.subf %11, %10 : vector<8x128xf32>
    %13 = math.exp %12 : vector<8x128xf32>
    %cst_6 = arith.constant 1.000000e+00 : f32
    %14 = vector.broadcast %cst_6 : f32 to vector<8x128xf32>
    %15 = arith.addf %14, %13 : vector<8x128xf32>
    %16 = math.log %15 : vector<8x128xf32>
    %17 = arith.addf %8, %16 : vector<8x128xf32>
    %18 = arith.subf %6, %17 : vector<8x128xf32>
    %c0_7 = arith.constant 0 : index
    %c0_8 = arith.constant 0 : index
    %19 = vector.load %arg4[%c0_7, %c0_8] : memref<8x256xf32, #tpu.memory_space<vmem>>, vector<8x128xf32>
    tpu.vector_store %arg4[%c0_7, %c0_8], %18 {strides = array<i32>} : memref<8x256xf32, #tpu.memory_space<vmem>>, vector<8x128xf32>,
    %20 = arith.subf %7, %17 : vector<8x128xf32>
    %c0_9 = arith.constant 0 : index
    %c128 = arith.constant 128 : index
    %21 = vector.load %arg4[%c0_9, %c128] : memref<8x256xf32, #tpu.memory_space<vmem>>, vector<8x128xf32>
    tpu.vector_store %arg4[%c0_9, %c128], %20 {strides = array<i32>} : memref<8x256xf32, #tpu.memory_space<vmem>>, vector<8x128xf32>,
    return
  }
  func.func @transform_0(%arg0: i32) -> (i32, i32) {
    %c0_i32 = arith.constant 0 : i32
    %c0_i32_0 = arith.constant 0 : i32
    return %arg0, %c0_i32 : i32, i32
  }
  func.func @transform_1(%arg0: i32) -> (i32, i32) {
    %c0_i32 = arith.constant 0 : i32
    %c0_i32_0 = arith.constant 0 : i32
    %c0_i32_1 = arith.constant 0 : i32
    return %c0_i32, %c0_i32_0 : i32, i32
  }
  func.func @transform_2(%arg0: i32) -> (i32, i32) {
    %c0_i32 = arith.constant 0 : i32
    %c0_i32_0 = arith.constant 0 : i32
    %c0_i32_1 = arith.constant 0 : i32
    return %c0_i32, %c0_i32_0 : i32, i32
  }
  func.func @transform_3(%arg0: i32) -> (i32, i32) {
    %c0_i32 = arith.constant 0 : i32
    %c0_i32_0 = arith.constant 0 : i32
    return %arg0, %c0_i32 : i32, i32
  }
}

</mosaic_0001>

<bundles_post_ra>
// kernel: tpu_custom_call.1
= control target key start
LH: loop header
LB: loop body
LE: loop exit
PB: predicated region body
PF: predicated region fallthrough
CT: control target
= control target key end

     0   :  { %8 = vsyncpa [#allocation3], 0  ;;  %s1559_s0 = inlined_call_operand.hbm [shape: bf16[8,1024], index: 0, kind: input, shape index: {}]   ;;  %s1560_s1 = inlined_call_operand.hbm [shape: bf16[1024,256], index: 1, kind: input, shape index: {}]   ;;  %s1561_s2 = inlined_call_operand.vmem [shape: f32[1,256], index: 2, kind: input, shape index: {}]   ;;  %s1562_s3 = inlined_call_operand.hbm [shape: f32[8,256], index: 3, kind: output, shape index: {}]  }
   0x1   :  { %9 = vsyncpa [#allocation6], 0 }
   0x2   :  { %10 = vsyncpa [#allocation4], 0  ;;  %s1476_s12 = smov [#allocation2]   ;;  %s1477_s14 = smov [#allocation5]  }
   0x3   :  { %s17_s13 = sshll.u32 %s1476_s12, 4  ;;  %s26_s15 = sshll.u32 %s1477_s14, 4  ;;  %s18_s13 = int_to_ptr.vmem [resolvable:$true] %s17_s13  ;;  %s1501_s15 = int_to_ptr.vmem [resolvable:$true] %s26_s15 }
   0x4   :  { %s1404_s18 = scalar_lea.hbm %s1559_s0, 512 }
   0x5   :  { %p1405_p0 = scmp.ne.s32.totalorder %s1559_s0, %s1404_s18  ;;  %p1408_p1 = scmp.lt.u32.totalorder %s1404_s18, %s1559_s0 }
   0x7   :  { %p1410_p2 = pnand %p1408_p1, %p1405_p0 }
   0x9   :  { %1413 = shalt.err (!%p1410_p2)
}
   0xa   :  { %s1414_s23 = scalar_lea.vmem %s18_s13, 512  ;;  %p1419_p4 = scmp.lt.s32.totalorder %s18_s13, %s18_s13 }
   0xb   :  { %p1415_p3 = scmp.ne.s32.totalorder %s18_s13, %s1414_s23  ;;  %p1420_p5 = scmp.lt.s32.totalorder %s1414_s23, %s1414_s23 }
   0xd   :  { %p1421_p6 = por %p1420_p5, %p1419_p4 }
   0xf   :  { %p1422_p7 = pnand %p1421_p6, %p1415_p3 }
  0x11   :  { %1425 = shalt.err (!%p1422_p7)
}
  0x12   :  { %20 = dma.hbm_to_vmem [thread:$0]  %s1559_s0, 512, %s18_s13, [#allocation3]  }
  0x13   :  { %s1426_s28 = scalar_lea.hbm %s1560_s1, 16384 }
  0x14   :  { %p1427_p8 = scmp.ne.s32.totalorder %s1560_s1, %s1426_s28  ;;  %p1430_p9 = scmp.lt.u32.totalorder %s1426_s28, %s1560_s1 }
  0x16   :  { %p1432_p10 = pnand %p1430_p9, %p1427_p8 }
  0x18   :  { %1435 = shalt.err (!%p1432_p10)
}
  0x19   :  { %s1436_s6 = scalar_lea.vmem %s1501_s15, 16384  ;;  %p1441_p12 = scmp.lt.s32.totalorder %s1501_s15, %s1501_s15 }
  0x1a   :  { %p1437_p11 = scmp.ne.s32.totalorder %s1501_s15, %s1436_s6  ;;  %p1442_p13 = scmp.lt.s32.totalorder %s1436_s6, %s1436_s6 }
  0x1c   :  { %p1443_p0 = por %p1442_p13, %p1441_p12 }
  0x1e   :  { %p1444_p1 = pnand %p1443_p0, %p1437_p11 }
  0x20   :  { %1447 = shalt.err (!%p1444_p1)
}
  0x21   :  { %s1478_s0 = smov 128   ;;  %s1479_s7 = smov 8  }
  0x22   :  { %32 = dma.hbm_to_vmem [thread:$0]  %s1560_s1, 16384, %s1501_s15, [#allocation6], %s1478_s0, %s1478_s0, %s1479_s7  }
  0x23   :  { %1470 = dma.done.wait [#allocation3], 512  }
  0x24   :  { %1471 = vsyncadd [#allocation3], 4294966784 }
  0x25   :  { %1472 = dma.done.wait [#allocation6], 16384  }
  0x26   :  { %1473 = vsyncadd [#allocation6], 4294950912  ;;  %v1200_v0 = vld [vmem:[#allocation5 + $0x4] ss:$8 sps:$4 sm:$0xff]   ;;  %v1204_v2 = vld [vmem:[#allocation5] ss:$8 sps:$4 sm:$0xff]  }
  0x27   :  { %v1202_v1 = vld [vmem:[#allocation5 + $0x204] ss:$8 sps:$4 sm:$0xff]   ;;  %853 = vmatprep.subr.bf16.mxu1 %v1200_v0  ;;  %v1205_v3 = vld [vmem:[#allocation5 + $0x200] ss:$8 sps:$4 sm:$0xff]   ;;  %v1206_v4 = vld [vmem:[#allocation5 + $0x14] ss:$8 sps:$4 sm:$0xff]  }
  0x28   :  { %935 = vmatprep.subr.bf16.mxu0 %v1202_v1  ;;  %854 = vmatpush1.bf16.msra.mxu1 %v1204_v2  ;;  %v1208_v5 = vld [vmem:[#allocation5 + $0x214] ss:$8 sps:$4 sm:$0xff]   ;;  %v1210_v6 = vld [vmem:[#allocation5 + $0x10] ss:$8 sps:$4 sm:$0xff]   ;;  %v1212_v8 = vld [vmem:[#allocation5 + $0x24] ss:$8 sps:$4 sm:$0xff]  }
  0x29   :  { %936 = vmatpush1.bf16.msra.mxu0 %v1205_v3  ;;  %855 = vmatprep.subr.bf16.mxu1 %v1206_v4  ;;  %v1211_v7 = vld [vmem:[#allocation5 + $0x210] ss:$8 sps:$4 sm:$0xff]   ;;  %v1214_v9 = vld [vmem:[#allocation5 + $0x224] ss:$8 sps:$4 sm:$0xff]   ;;  %v1216_v10 = vld [vmem:[#allocation5 + $0x20] ss:$8 sps:$4 sm:$0xff]  }
  0x2a   :  { %937 = vmatprep.subr.bf16.mxu0 %v1208_v5  ;;  %v1217_v11 = vld [vmem:[#allocation5 + $0x220] ss:$8 sps:$4 sm:$0xff]   ;;  %v1218_v12 = vld [vmem:[#allocation5 + $0x34] ss:$8 sps:$4 sm:$0xff]   ;;  %v1222_v14 = vld [vmem:[#allocation5 + $0x30] ss:$8 sps:$4 sm:$0xff]  }
  0x2b   :  { %v1220_v13 = vld [vmem:[#allocation5 + $0x234] ss:$8 sps:$4 sm:$0xff]   ;;  %v1223_v15 = vld [vmem:[#allocation5 + $0x230] ss:$8 sps:$4 sm:$0xff]   ;;  %v1224_v16 = vld [vmem:[#allocation5 + $0x44] ss:$8 sps:$4 sm:$0xff]  }
  0x2c   :  { %856 = vmatpush1.bf16.msra.mxu1 %v1210_v6  ;;  %v1226_v17 = vld [vmem:[#allocation5 + $0x244] ss:$8 sps:$4 sm:$0xff]   ;;  %v1228_v18 = vld [vmem:[#allocation5 + $0x40] ss:$8 sps:$4 sm:$0xff]   ;;  %v1230_v20 = vld [vmem:[#allocation5 + $0x54] ss:$8 sps:$4 sm:$0xff]  }
  0x2d   :  { %938 = vmatpush1.bf16.msra.mxu0 %v1211_v7  ;;  %857 = vmatprep.subr.bf16.mxu1 %v1212_v8  ;;  %v1229_v19 = vld [vmem:[#allocation5 + $0x240] ss:$8 sps:$4 sm:$0xff]   ;;  %v1232_v21 = vld [vmem:[#allocation5 + $0x254] ss:$8 sps:$4 sm:$0xff]   ;;  %v1234_v22 = vld [vmem:[#allocation5 + $0x50] ss:$8 sps:$4 sm:$0xff]  }
  0x2e   :  { %939 = vmatprep.subr.bf16.mxu0 %v1214_v9  ;;  %v1235_v23 = vld [vmem:[#allocation5 + $0x250] ss:$8 sps:$4 sm:$0xff]   ;;  %v1236_v24 = vld [vmem:[#allocation5 + $0x64] ss:$8 sps:$4 sm:$0xff]   ;;  %v1240_v26 = vld [vmem:[#allocation5 + $0x60] ss:$8 sps:$4 sm:$0xff]  }
  0x2f   :  { %v1238_v25 = vld [vmem:[#allocation5 + $0x264] ss:$8 sps:$4 sm:$0xff]   ;;  %v1241_v27 = vld [vmem:[#allocation5 + $0x260] ss:$8 sps:$4 sm:$0xff]   ;;  %v1242_v28 = vld [vmem:[#allocation5 + $0x74] ss:$8 sps:$4 sm:$0xff]  }
  0x30   :  { %858 = vmatpush1.bf16.msra.mxu1 %v1216_v10  ;;  %v1244_v29 = vld [vmem:[#allocation5 + $0x274] ss:$8 sps:$4 sm:$0xff]   ;;  %v1246_v30 = vld [vmem:[#allocation5 + $0x70] ss:$8 sps:$4 sm:$0xff]   ;;  %v1248_v32 = vld [vmem:[#allocation5 + $0x84] ss:$8 sps:$4 sm:$0xff]  }
  0x31   :  { %940 = vmatpush1.bf16.msra.mxu0 %v1217_v11  ;;  %859 = vmatprep.subr.bf16.mxu1 %v1218_v12  ;;  %v1247_v31 = vld [vmem:[#allocation5 + $0x270] ss:$8 sps:$4 sm:$0xff]   ;;  %v1250_v33 = vld [vmem:[#allocation5 + $0x284] ss:$8 sps:$4 sm:$0xff]   ;;  %v1252_v34 = vld [vmem:[#allocation5 + $0x80] ss:$8 sps:$4 sm:$0xff]  }
  0x32   :  { %941 = vmatprep.subr.bf16.mxu0 %v1220_v13  ;;  %v1253_v35 = vld [vmem:[#allocation5 + $0x280] ss:$8 sps:$4 sm:$0xff]   ;;  %v1254_v36 = vld [vmem:[#allocation5 + $0x94] ss:$8 sps:$4 sm:$0xff]   ;;  %v1258_v38 = vld [vmem:[#allocation5 + $0x90] ss:$8 sps:$4 sm:$0xff]  }
  0x33   :  { %v1256_v37 = vld [vmem:[#allocation5 + $0x294] ss:$8 sps:$4 sm:$0xff]   ;;  %v1259_v39 = vld [vmem:[#allocation5 + $0x290] ss:$8 sps:$4 sm:$0xff]   ;;  %v1260_v40 = vld [vmem:[#allocation5 + $0xa4] ss:$8 sps:$4 sm:$0xff]  }
  0x34   :  { %860 = vmatpush1.bf16.msra.mxu1 %v1222_v14  ;;  %v1262_v41 = vld [vmem:[#allocation5 + $0x2a4] ss:$8 sps:$4 sm:$0xff]   ;;  %v1264_v42 = vld [vmem:[#allocation5 + $0xa0] ss:$8 sps:$4 sm:$0xff]   ;;  %v1266_v44 = vld [vmem:[#allocation5 + $0xb4] ss:$8 sps:$4 sm:$0xff]  }
  0x35   :  { %942 = vmatpush1.bf16.msra.mxu0 %v1223_v15  ;;  %861 = vmatprep.subr.bf16.mxu1 %v1224_v16  ;;  %v1265_v43 = vld [vmem:[#allocation5 + $0x2a0] ss:$8 sps:$4 sm:$0xff]   ;;  %v1268_v45 = vld [vmem:[#allocation5 + $0x2b4] ss:$8 sps:$4 sm:$0xff]   ;;  %v1270_v47 = vld [vmem:[#allocation5 + $0xb0] ss:$8 sps:$4 sm:$0xff]  }
  0x36   :  { %943 = vmatprep.subr.bf16.mxu0 %v1226_v17  ;;  %v41_v46 = vld [vmem:[#allocation2] sm:$0xff]  ;;  %v1271_v49 = vld [vmem:[#allocation5 + $0x2b0] ss:$8 sps:$4 sm:$0xff]   ;;  %v1278_v56 = vld [vmem:[#allocation5 + $0xd4] ss:$8 sps:$4 sm:$0xff]  }
  0x37   :  { %v1048_v48 = vcombine.high %v41_v46, %v41_v46  ;;  %v43_v50 = vld [vmem:[#allocation2 + $0x10] sm:$0xff]  ;;  %v1272_v51 = vld [vmem:[#allocation5 + $0xc4] ss:$8 sps:$4 sm:$0xff]   ;;  %v1276_v54 = vld [vmem:[#allocation5 + $0xc0] ss:$8 sps:$4 sm:$0xff]   ;;  %v1047_v6 = vcombine.low %v41_v46, %v41_v46 }
  0x38   :  { %862 = vmatpush1.bf16.msra.mxu1 %v1228_v18  ;;  %v1274_v52 = vld [vmem:[#allocation5 + $0x2c4] ss:$8 sps:$4 sm:$0xff]   ;;  %v1052_v53 = vcombine.high %v43_v50, %v43_v50  ;;  %v1277_v55 = vld [vmem:[#allocation5 + $0x2c0] ss:$8 sps:$4 sm:$0xff]   ;;  %v1280_v57 = vld [vmem:[#allocation5 + $0x2d4] ss:$8 sps:$4 sm:$0xff]   ;;  %v1051_v7 = vcombine.low %v43_v50, %v43_v50 }
  0x39   :  { %944 = vmatpush1.bf16.msra.mxu0 %v1229_v19  ;;  %863 = vmatprep.subr.bf16.mxu1 %v1230_v20  ;;  %v1282_v58 = vld [vmem:[#allocation5 + $0xd0] ss:$8 sps:$4 sm:$0xff]   ;;  %v1284_v60 = vld [vmem:[#allocation5 + $0xe4] ss:$8 sps:$4 sm:$0xff]   ;;  %v1288_v62 = vld [vmem:[#allocation5 + $0xe0] ss:$8 sps:$4 sm:$0xff]  }
  0x3a   :  { %945 = vmatprep.subr.bf16.mxu0 %v1232_v21  ;;  %885 = vmatprep.mubr.bf16.mxu1 %v1048_v48  ;;  %v1283_v59 = vld [vmem:[#allocation5 + $0x2d0] ss:$8 sps:$4 sm:$0xff]   ;;  %v1286_v61 = vld [vmem:[#allocation5 + $0x2e4] ss:$8 sps:$4 sm:$0xff]   ;;  %v1289_v63 = vld [vmem:[#allocation5 + $0x2e0] ss:$8 sps:$4 sm:$0xff]  }
  0x3b   :  { %967 = vmatprep.mubr.bf16.mxu0 %v1052_v53  ;;  %v1290_v0 = vld [vmem:[#allocation5 + $0xf4] ss:$8 sps:$4 sm:$0xff]   ;;  %v1294_v2 = vld [vmem:[#allocation5 + $0xf0] ss:$8 sps:$4 sm:$0xff]   ;;  %v1300_v4 = vld [vmem:[#allocation5 + $0x104] ss:$8 sps:$4 sm:$0xff]  }
  0x3c   :  { %864 = vmatpush1.bf16.msra.mxu1 %v1234_v22  ;;  %v1292_v1 = vld [vmem:[#allocation5 + $0x2f4] ss:$8 sps:$4 sm:$0xff]   ;;  %v1295_v3 = vld [vmem:[#allocation5 + $0x2f0] ss:$8 sps:$4 sm:$0xff]   ;;  %v1305_v5 = vld [vmem:[#allocation5 + $0x304] ss:$8 sps:$4 sm:$0xff]  }
  0x3d   :  { %946 = vmatpush1.bf16.msra.mxu0 %v1235_v23  ;;  %865 = vmatprep.subr.bf16.mxu1 %v1236_v24  ;;  %v1298_v8 = vld [vmem:[#allocation5 + $0x100] ss:$8 sps:$4 sm:$0xff]   ;;  %v1308_v10 = vld [vmem:[#allocation5 + $0x114] ss:$8 sps:$4 sm:$0xff]   ;;  %v1306_v12 = vld [vmem:[#allocation5 + $0x110] ss:$8 sps:$4 sm:$0xff]  }
  0x3e   :  { %947 = vmatprep.subr.bf16.mxu0 %v1238_v25  ;;  %v1303_v9 = vld [vmem:[#allocation5 + $0x300] ss:$8 sps:$4 sm:$0xff]   ;;  %v1311_v11 = vld [vmem:[#allocation5 + $0x314] ss:$8 sps:$4 sm:$0xff]   ;;  %v1309_v13 = vld [vmem:[#allocation5 + $0x310] ss:$8 sps:$4 sm:$0xff]  }
  0x3f   :  { %v1314_v14 = vld [vmem:[#allocation5 + $0x124] ss:$8 sps:$4 sm:$0xff]   ;;  %v1312_v16 = vld [vmem:[#allocation5 + $0x120] ss:$8 sps:$4 sm:$0xff]   ;;  %v1320_v18 = vld [vmem:[#allocation5 + $0x134] ss:$8 sps:$4 sm:$0xff]  }
  0x40   :  { %866 = vmatpush1.bf16.msra.mxu1 %v1240_v26  ;;  %v1317_v15 = vld [vmem:[#allocation5 + $0x324] ss:$8 sps:$4 sm:$0xff]   ;;  %v1315_v17 = vld [vmem:[#allocation5 + $0x320] ss:$8 sps:$4 sm:$0xff]   ;;  %v1323_v19 = vld [vmem:[#allocation5 + $0x334] ss:$8 sps:$4 sm:$0xff]  }
  0x41   :  { %948 = vmatpush1.bf16.msra.mxu0 %v1241_v27  ;;  %867 = vmatprep.subr.bf16.mxu1 %v1242_v28  ;;  %v1318_v20 = vld [vmem:[#allocation5 + $0x130] ss:$8 sps:$4 sm:$0xff]   ;;  %v1326_v22 = vld [vmem:[#allocation5 + $0x144] ss:$8 sps:$4 sm:$0xff]   ;;  %v1324_v24 = vld [vmem:[#allocation5 + $0x140] ss:$8 sps:$4 sm:$0xff]  }
  0x42   :  { %949 = vmatprep.subr.bf16.mxu0 %v1244_v29  ;;  %v1321_v21 = vld [vmem:[#allocation5 + $0x330] ss:$8 sps:$4 sm:$0xff]   ;;  %v1329_v23 = vld [vmem:[#allocation5 + $0x344] ss:$8 sps:$4 sm:$0xff]   ;;  %v1327_v25 = vld [vmem:[#allocation5 + $0x340] ss:$8 sps:$4 sm:$0xff]  }
  0x43   :  { %v1332_v26 = vld [vmem:[#allocation5 + $0x154] ss:$8 sps:$4 sm:$0xff]   ;;  %v1330_v28 = vld [vmem:[#allocation5 + $0x150] ss:$8 sps:$4 sm:$0xff]   ;;  %v1362_v50 = vld [vmem:[#allocation5 + $0x1a4] ss:$8 sps:$4 sm:$0xff]  }
  0x44   :  { %868 = vmatpush1.bf16.msra.mxu1 %v1246_v30  ;;  %v1335_v27 = vld [vmem:[#allocation5 + $0x354] ss:$8 sps:$4 sm:$0xff]   ;;  %v1333_v29 = vld [vmem:[#allocation5 + $0x350] ss:$8 sps:$4 sm:$0xff]   ;;  %v1338_v30 = vld [vmem:[#allocation5 + $0x164] ss:$8 sps:$4 sm:$0xff]  }
  0x45   :  { %950 = vmatpush1.bf16.msra.mxu0 %v1247_v31  ;;  %869 = vmatprep.subr.bf16.mxu1 %v1248_v32  ;;  %v1341_v31 = vld [vmem:[#allocation5 + $0x364] ss:$8 sps:$4 sm:$0xff]   ;;  %v1356_v46 = vld [vmem:[#allocation5 + $0x194] ss:$8 sps:$4 sm:$0xff]   ;;  %v1354_v48 = vld [vmem:[#allocation5 + $0x190] ss:$8 sps:$4 sm:$0xff]  }
  0x46   :  { %951 = vmatprep.subr.bf16.mxu0 %v1250_v33  ;;  %v1532_v32 = vld [vmem:[#allocation2 + $0x8] sm:$0xff]  ;;  %v1534_v33 = vld [vmem:[#allocation2 + $0x18] sm:$0xff] }
  0x47   :  { %v1363_v53 = vld [vmem:[#allocation5 + $0x3a0] ss:$8 sps:$4 sm:$0xff]  }
  0x48   :  { %870 = vmatpush1.bf16.msra.mxu1 %v1252_v34  ;;  %v1050_v34 = vcombine.high %v1532_v32, %v1532_v32 }
  0x49   :  { %952 = vmatpush1.bf16.msra.mxu0 %v1253_v35  ;;  %871 = vmatprep.subr.bf16.mxu1 %v1254_v36  ;;  %v1054_v35 = vcombine.high %v1534_v33, %v1534_v33  ;;  %v1336_v36 = vld [vmem:[#allocation5 + $0x160] ss:$8 sps:$4 sm:$0xff]  }
  0x4a   :  { %953 = vmatprep.subr.bf16.mxu0 %v1256_v37  ;;  %v1339_v37 = vld [vmem:[#allocation5 + $0x360] ss:$8 sps:$4 sm:$0xff]  }
  0x4c   :  { %872 = vmatpush1.bf16.msra.mxu1 %v1258_v38  ;;  %v1344_v38 = vld [vmem:[#allocation5 + $0x174] ss:$8 sps:$4 sm:$0xff]  }
  0x4d   :  { %954 = vmatpush1.bf16.msra.mxu0 %v1259_v39  ;;  %873 = vmatprep.subr.bf16.mxu1 %v1260_v40  ;;  %v1347_v39 = vld [vmem:[#allocation5 + $0x374] ss:$8 sps:$4 sm:$0xff]   ;;  %v1342_v40 = vld [vmem:[#allocation5 + $0x170] ss:$8 sps:$4 sm:$0xff]  }
  0x4e   :  { %955 = vmatprep.subr.bf16.mxu0 %v1262_v41  ;;  %v1345_v41 = vld [vmem:[#allocation5 + $0x370] ss:$8 sps:$4 sm:$0xff]  }
  0x50   :  { %874 = vmatpush1.bf16.msra.mxu1 %v1264_v42  ;;  %v1350_v42 = vld [vmem:[#allocation5 + $0x184] ss:$8 sps:$4 sm:$0xff]  }
  0x51   :  { %956 = vmatpush1.bf16.msra.mxu0 %v1265_v43  ;;  %875 = vmatprep.subr.bf16.mxu1 %v1266_v44  ;;  %v1353_v43 = vld [vmem:[#allocation5 + $0x384] ss:$8 sps:$4 sm:$0xff]   ;;  %v1348_v44 = vld [vmem:[#allocation5 + $0x180] ss:$8 sps:$4 sm:$0xff]  }
  0x52   :  { %957 = vmatprep.subr.bf16.mxu0 %v1268_v45  ;;  %v1351_v45 = vld [vmem:[#allocation5 + $0x380] ss:$8 sps:$4 sm:$0xff]  }
  0x54   :  { %876 = vmatpush1.bf16.msra.mxu1 %v1270_v47  ;;  %v1359_v47 = vld [vmem:[#allocation5 + $0x394] ss:$8 sps:$4 sm:$0xff]  }
  0x55   :  { %958 = vmatpush1.bf16.msra.mxu0 %v1271_v49  ;;  %877 = vmatprep.subr.bf16.mxu1 %v1272_v51  ;;  %v1357_v49 = vld [vmem:[#allocation5 + $0x390] ss:$8 sps:$4 sm:$0xff]   ;;  %v1365_v51 = vld [vmem:[#allocation5 + $0x3a4] ss:$8 sps:$4 sm:$0xff]  }
  0x56   :  { %959 = vmatprep.subr.bf16.mxu0 %v1274_v52  ;;  %v1360_v52 = vld [vmem:[#allocation5 + $0x1a0] ss:$8 sps:$4 sm:$0xff]  }
  0x58   :  { %878 = vmatpush1.bf16.msra.mxu1 %v1276_v54  ;;  %v1368_v54 = vld [vmem:[#allocation5 + $0x1b4] ss:$8 sps:$4 sm:$0xff]  }
  0x59   :  { %960 = vmatpush1.bf16.msra.mxu0 %v1277_v55  ;;  %879 = vmatprep.subr.bf16.mxu1 %v1278_v56  ;;  %v1371_v55 = vld [vmem:[#allocation5 + $0x3b4] ss:$8 sps:$4 sm:$0xff]   ;;  %v1366_v56 = vld [vmem:[#allocation5 + $0x1b0] ss:$8 sps:$4 sm:$0xff]  }
  0x5a   :  { %961 = vmatprep.subr.bf16.mxu0 %v1280_v57  ;;  %v1369_v57 = vld [vmem:[#allocation5 + $0x3b0] ss:$8 sps:$4 sm:$0xff]  }
  0x5c   :  { %880 = vmatpush1.bf16.msra.mxu1 %v1282_v58  ;;  %v1374_v58 = vld [vmem:[#allocation5 + $0x1c4] ss:$8 sps:$4 sm:$0xff]  }
  0x5d   :  { %962 = vmatpush1.bf16.msra.mxu0 %v1283_v59  ;;  %881 = vmatprep.subr.bf16.mxu1 %v1284_v60  ;;  %v1377_v59 = vld [vmem:[#allocation5 + $0x3c4] ss:$8 sps:$4 sm:$0xff]   ;;  %v1372_v60 = vld [vmem:[#allocation5 + $0x1c0] ss:$8 sps:$4 sm:$0xff]  }
  0x5e   :  { %963 = vmatprep.subr.bf16.mxu0 %v1286_v61  ;;  %v1375_v61 = vld [vmem:[#allocation5 + $0x3c0] ss:$8 sps:$4 sm:$0xff]  }
  0x60   :  { %882 = vmatpush1.bf16.msra.mxu1 %v1288_v62  ;;  %v1380_v62 = vld [vmem:[#allocation5 + $0x1d4] ss:$8 sps:$4 sm:$0xff]  }
  0x61   :  { %964 = vmatpush1.bf16.msra.mxu0 %v1289_v63  ;;  %883 = vmatprep.subr.bf16.mxu1 %v1290_v0  ;;  %v1383_v63 = vld [vmem:[#allocation5 + $0x3d4] ss:$8 sps:$4 sm:$0xff]   ;;  %v1378_v0 = vld [vmem:[#allocation5 + $0x1d0] ss:$8 sps:$4 sm:$0xff]  }
  0x62   :  { %965 = vmatprep.subr.bf16.mxu0 %v1292_v1  ;;  %v1381_v1 = vld [vmem:[#allocation5 + $0x3d0] ss:$8 sps:$4 sm:$0xff]  }
  0x64   :  { %884 = vmatpush1.bf16.msra.mxu1 %v1294_v2  ;;  %v1386_v2 = vld [vmem:[#allocation5 + $0x1e4] ss:$8 sps:$4 sm:$0xff]  }
  0x65   :  { %966 = vmatpush1.bf16.msra.mxu0 %v1295_v3  ;;  %894 = vmatprep.subr.bf16.mxu1 %v1300_v4  ;;  %v1389_v3 = vld [vmem:[#allocation5 + $0x3e4] ss:$8 sps:$4 sm:$0xff]   ;;  %v1384_v4 = vld [vmem:[#allocation5 + $0x1e0] ss:$8 sps:$4 sm:$0xff]  }
  0x66   :  { %976 = vmatprep.subr.bf16.mxu0 %v1305_v5  ;;  %v1387_v5 = vld [vmem:[#allocation5 + $0x3e0] ss:$8 sps:$4 sm:$0xff]  }
  0x67   :  { %886 = vmatmul.mubr.bf16.vlgmr.msra.gmra.mrb[0].mxu1 %v1047_v6  ;;  %v1392_v6 = vld [vmem:[#allocation5 + $0x1f4] ss:$8 sps:$4 sm:$0xff]  }
  0x68   :  { %968 = vmatmul.mubr.bf16.vlgmr.msra.gmra.mrb[0].mxu0 %v1051_v7  ;;  %895 = vmatpush1.bf16.msra.mxu1 %v1298_v8  ;;  %v1395_v7 = vld [vmem:[#allocation5 + $0x3f4] ss:$8 sps:$4 sm:$0xff]   ;;  %v1390_v8 = vld [vmem:[#allocation5 + $0x1f0] ss:$8 sps:$4 sm:$0xff]  }
  0x69   :  { %977 = vmatpush1.bf16.msra.mxu0 %v1303_v9  ;;  %896 = vmatprep.subr.bf16.mxu1 %v1308_v10  ;;  %v1393_v9 = vld [vmem:[#allocation5 + $0x3f0] ss:$8 sps:$4 sm:$0xff]   ;;  %v1049_v10 = vcombine.low %v1532_v32, %v1532_v32 }
  0x6a   :  { %978 = vmatprep.subr.bf16.mxu0 %v1311_v11  ;;  %926 = vmatprep.mubr.bf16.mxu1 %v1050_v34  ;;  %v1053_v11 = vcombine.low %v1534_v33, %v1534_v33 }
  0x6b   :  { %1008 = vmatprep.mubr.bf16.mxu0 %v1054_v35 }
  0x6c   :  { %897 = vmatpush1.bf16.msra.mxu1 %v1306_v12  ;;  %v175_v12 = vlaneseq }
  0x6d   :  { %979 = vmatpush1.bf16.msra.mxu0 %v1309_v13  ;;  %898 = vmatprep.subr.bf16.mxu1 %v1314_v14 }
  0x6e   :  { %980 = vmatprep.subr.bf16.mxu0 %v1317_v15  ;;  %v176_v13 = vshrl.u32 %v175_v12, 7  ;;  %v173_v15 = vld [vmem:[%s1561_s2] sm:$0x3]  ;;  %s1480_s2 = smov [#allocation7]  }
  0x6f   :  { %s1037_s11 = sshll.u32 %s1480_s2, 4  ;;  %s1038_s11 = int_to_ptr.vmem [resolvable:$true] %s1037_s11 }
  0x70   :  { %899 = vmatpush1.bf16.msra.mxu1 %v1312_v16  ;;  %v177_v14 = vsub.s32 0, %v176_v13  ;;  %v181_v16 = vsub.s32 1, %v176_v13  ;;  %s1448_s12 = scalar_lea.vmem %s1038_s11, 256  ;;  %p1453_p3 = scmp.lt.s32.totalorder %s1038_s11, %s1038_s11 }
  0x71   :  { %981 = vmatpush1.bf16.msra.mxu0 %v1315_v17  ;;  %900 = vmatprep.subr.bf16.mxu1 %v1320_v18  ;;  %p1449_p2 = scmp.ne.s32.totalorder %s1038_s11, %s1448_s12  ;;  %p1454_p4 = scmp.lt.s32.totalorder %s1448_s12, %s1448_s12 }
  0x72   :  { %982 = vmatprep.subr.bf16.mxu0 %v1323_v19  ;;  %v178_v17 = vrot.slane %v173_v15, %v177_v14  ;;  %v182_v18 = vrot.slane %v173_v15, %v181_v16 }
  0x73   :  { %p1455_p5 = por %p1454_p4, %p1453_p3 }
  0x74   :  { %901 = vmatpush1.bf16.msra.mxu1 %v1318_v20 }
  0x75   :  { %983 = vmatpush1.bf16.msra.mxu0 %v1321_v21  ;;  %902 = vmatprep.subr.bf16.mxu1 %v1326_v22  ;;  %p1456_p6 = pnand %p1455_p5, %p1449_p2 }
  0x76   :  { %984 = vmatprep.subr.bf16.mxu0 %v1329_v23 }
  0x78   :  { %903 = vmatpush1.bf16.msra.mxu1 %v1324_v24 }
  0x79   :  { %985 = vmatpush1.bf16.msra.mxu0 %v1327_v25  ;;  %904 = vmatprep.subr.bf16.mxu1 %v1332_v26 }
  0x7a   :  { %986 = vmatprep.subr.bf16.mxu0 %v1335_v27 }
  0x7c   :  { %905 = vmatpush1.bf16.msra.mxu1 %v1330_v28 }
  0x7d   :  { %987 = vmatpush1.bf16.msra.mxu0 %v1333_v29  ;;  %906 = vmatprep.subr.bf16.mxu1 %v1338_v30 }
  0x7e   :  { %988 = vmatprep.subr.bf16.mxu0 %v1341_v31 }
  0x80   :  { %907 = vmatpush1.bf16.msra.mxu1 %v1336_v36 }
  0x81   :  { %989 = vmatpush1.bf16.msra.mxu0 %v1339_v37  ;;  %908 = vmatprep.subr.bf16.mxu1 %v1344_v38 }
  0x82   :  { %990 = vmatprep.subr.bf16.mxu0 %v1347_v39 }
  0x84   :  { %909 = vmatpush1.bf16.msra.mxu1 %v1342_v40 }
  0x85   :  { %991 = vmatpush1.bf16.msra.mxu0 %v1345_v41  ;;  %910 = vmatprep.subr.bf16.mxu1 %v1350_v42 }
  0x86   :  { %992 = vmatprep.subr.bf16.mxu0 %v1353_v43 }
  0x88   :  { %911 = vmatpush1.bf16.msra.mxu1 %v1348_v44 }
  0x89   :  { %993 = vmatpush1.bf16.msra.mxu0 %v1351_v45  ;;  %912 = vmatprep.subr.bf16.mxu1 %v1356_v46 }
  0x8a   :  { %994 = vmatprep.subr.bf16.mxu0 %v1359_v47 }
  0x8c   :  { %913 = vmatpush1.bf16.msra.mxu1 %v1354_v48 }
  0x8d   :  { %995 = vmatpush1.bf16.msra.mxu0 %v1357_v49  ;;  %914 = vmatprep.subr.bf16.mxu1 %v1362_v50 }
  0x8e   :  { %996 = vmatprep.subr.bf16.mxu0 %v1365_v51 }
  0x90   :  { %915 = vmatpush1.bf16.msra.mxu1 %v1360_v52 }
  0x91   :  { %997 = vmatpush1.bf16.msra.mxu0 %v1363_v53  ;;  %916 = vmatprep.subr.bf16.mxu1 %v1368_v54 }
  0x92   :  { %998 = vmatprep.subr.bf16.mxu0 %v1371_v55 }
  0x94   :  { %917 = vmatpush1.bf16.msra.mxu1 %v1366_v56 }
  0x95   :  { %999 = vmatpush1.bf16.msra.mxu0 %v1369_v57  ;;  %918 = vmatprep.subr.bf16.mxu1 %v1374_v58 }
  0x96   :  { %1000 = vmatprep.subr.bf16.mxu0 %v1377_v59 }
  0x98   :  { %919 = vmatpush1.bf16.msra.mxu1 %v1372_v60 }
  0x99   :  { %1001 = vmatpush1.bf16.msra.mxu0 %v1375_v61  ;;  %920 = vmatprep.subr.bf16.mxu1 %v1380_v62 }
  0x9a   :  { %1002 = vmatprep.subr.bf16.mxu0 %v1383_v63 }
  0x9c   :  { %921 = vmatpush1.bf16.msra.mxu1 %v1378_v0 }
  0x9d   :  { %1003 = vmatpush1.bf16.msra.mxu0 %v1381_v1  ;;  %922 = vmatprep.subr.bf16.mxu1 %v1386_v2 }
  0x9e   :  { %1004 = vmatprep.subr.bf16.mxu0 %v1389_v3 }
  0xa0   :  { %923 = vmatpush1.bf16.msra.mxu1 %v1384_v4 }
  0xa1   :  { %1005 = vmatpush1.bf16.msra.mxu0 %v1387_v5  ;;  %924 = vmatprep.subr.bf16.mxu1 %v1392_v6 }
  0xa2   :  { %1006 = vmatprep.subr.bf16.mxu0 %v1395_v7 }
  0xa4   :  { %925 = vmatpush1.bf16.msra.mxu1 %v1390_v8 }
  0xa5   :  { %1007 = vmatpush1.bf16.msra.mxu0 %v1393_v9 }
  0xa7   :  { %927 = vmatmul.mubr.bf16.vlgmr.msra.gmra.mrb[0].mxu1 %v1049_v10 }
  0xa8   :  { %1009 = vmatmul.mubr.bf16.vlgmr.msra.gmra.mrb[0].mxu0 %v1053_v11 }
 0x17a   :  { %v928_v19 = vpop.f32.mrb[0].mxu1 }
 0x17b   :  { %v1010_v20 = vpop.f32.mrb[0].mxu0  ;;  %v1183_v21 = vadd.f32 %v928_v19, %v178_v17  ;;  %v930_v22 = vpop.f32.mrb[1].mxu1 }
 0x17c   :  { %v1012_v23 = vpop.f32.mrb[1].mxu0  ;;  %v1185_v24 = vadd.f32 %v930_v22, %v182_v18  ;;  %v932_v25 = vpop.f32.mrb[2].mxu1 }
 0x17d   :  { %v1014_v26 = vpop.f32.mrb[2].mxu0  ;;  %v1184_v27 = vadd.f32 %v1183_v21, %v1010_v20  ;;  %v933_v28 = vpop.f32.mrb[3].mxu1 }
 0x17e   :  { %v1015_v29 = vpop.f32.mrb[3].mxu0  ;;  %v1186_v30 = vadd.f32 %v1185_v24, %v1012_v23 }
 0x180   :  { %v1017_v31 = vmax.f32 %v1184_v27, %v1186_v30  ;;  %v1018_v32 = vsub.f32 %v1186_v30, %v1184_v27 }
 0x182   :  { %v1019_v33 = vand.u32 2147483647, %v1018_v32 }
 0x184   :  { %v1020_v34 = vsub.f32 0.0, %v1019_v33 }
 0x186   :  { %v1021_v35 = vmul.f32 1.442695, %v1020_v34 }
 0x188   :  { %1400 = vpow2.f32 %v1021_v35 }
 0x192   :  { %v1401_v36 = vpop.eup %1400 }
 0x193   :  { %v1023_v37 = vadd.f32 1.0, %v1401_v36 }
 0x195   :  { %1402 = vlog2.f32 %v1023_v37 }
 0x19f   :  { %v1403_v38 = vpop.eup %1402 }
 0x1a0   :  { %v1025_v39 = vmul.f32 0.6931472, %v1403_v38 }
 0x1a2   :  { %v1026_v40 = vadd.f32 %v1025_v39, %v1017_v31 }
 0x1a4   :  { %v1029_v41 = vsub.f32 %v1186_v30, %v1026_v40  ;;  %v1027_v42 = vsub.f32 %v1184_v27, %v1026_v40 }
 0x1a6   :  { %1030 = vst [vmem:[#allocation7 + $0x8] sm:$0xff] %v1029_v41  ;;  %1028 = vst [vmem:[#allocation7] sm:$0xff] %v1027_v42 }
 0x1a7   :  { %1459 = shalt.err (!%p1456_p6)
}
 0x1a8   :  { %s1460_s15 = scalar_lea.hbm %s1562_s3, 256 }
 0x1a9   :  { %p1461_p7 = scmp.ne.s32.totalorder %s1562_s3, %s1460_s15  ;;  %p1464_p8 = scmp.lt.u32.totalorder %s1460_s15, %s1562_s3 }
 0x1ab   :  { %p1466_p9 = pnand %p1464_p8, %p1461_p7 }
 0x1ad   :  { %1469 = shalt.err (!%p1466_p9)
}
 0x1ae   :  { %1040 = dma.vmem_to_hbm [thread:$0]  %s1038_s11, 256, %s1562_s3, [#allocation4]  }
 0x1af   :  { %1474 = dma.done.wait [#allocation4], 256  }
 0x1b0   :  { %1475 = vsyncadd [#allocation4], 4294967040 }
 0x1b1   :  { %1044 = vsyncpa [#allocation3], 1 }
 0x1b2   :  { %1045 = vsyncpa [#allocation6], 1 }
 0x1b3   :  { %1046 = vsyncpa [#allocation4], 1 }

</bundles_post_ra>
